<compile_context>
chip_gen: v7x
topology: tpu7x:2x2x1
jax: 0.10.0
libtpu: 0.0.40
codegen_flags: <defaults>
</compile_context>

<pallas_src>
import functools

import jax
import jax.numpy as jnp
from jax.experimental import pallas as pl
from jax.experimental.pallas import tpu as pltpu

LANES = 128
SUBLANES = 8
# 2048 rows * 128 lanes * 4 B = 1 MiB per f32 input block; 2 inputs x 2
# pipeline buffers = ~4 MiB VMEM -> safe on v5e (16 MiB scoped), v6e and v7x.
DEFAULT_TILE_ROWS = 2048


def _mse_partial_kernel(p_ref, t_ref, o_ref, *, tile_rows, rows, needs_mask):
    """Per-tile partial sum of squared differences.

    p_ref/t_ref: (tile_rows, LANES) input tiles (upcast to f32 in-kernel).
    o_ref:       (SUBLANES, LANES) lane-dense partial-sum block for this tile.
    """
    d = p_ref[...].astype(jnp.float32) - t_ref[...].astype(jnp.float32)
    sq = d * d

    if needs_mask:
        # Only the last tile can hang over the end of the (rows, LANES) slab;
        # zero those out-of-range rows. Row indices stay <= rows, so there is
        # no flat-index int32 overflow concern even for huge inputs.
        row = (jax.lax.broadcasted_iota(jnp.int32, (tile_rows, LANES), 0)
               + pl.program_id(0) * tile_rows)
        sq = jnp.where(row < rows, sq, 0.0)

    # (tile_rows, LANES) -> (tile_rows//8, 8, LANES) is sublane-group aligned
    # (layout-free); the sum over the leading axis is pure VPU adds.  The
    # expensive cross-lane reduction is deferred to a tiny reduce outside the
    # kernel, once, over all partial blocks.
    o_ref[...] = jnp.sum(
        sq.reshape(tile_rows // SUBLANES, SUBLANES, LANES), axis=0)


@jax.jit
def mse_loss(prediction, target):
    assert prediction.shape == target.shape
    n = prediction.size
    if n == 0:
        # torch.mean of an empty tensor is NaN.
        return jnp.float32(jnp.nan)

    p = prediction.reshape(-1)
    t = target.reshape(-1)

    # Pad only up to the next multiple of LANES (<= 127 elements; statically
    # skipped for lane-aligned sizes). Padded entries are zero in both arrays,
    # so they contribute nothing to the sum of squares.
    padded = ((n + LANES - 1) // LANES) * LANES
    if padded != n:
        p = jnp.pad(p, (0, padded - n))
        t = jnp.pad(t, (0, padded - n))

    rows = padded // LANES
    tile_rows = min(DEFAULT_TILE_ROWS,
                    ((rows + SUBLANES - 1) // SUBLANES) * SUBLANES)
    num_tiles = (rows + tile_rows - 1) // tile_rows          # static int math
    needs_mask = (rows % tile_rows) != 0

    p2 = p.reshape(rows, LANES)
    t2 = t.reshape(rows, LANES)

    kernel = functools.partial(_mse_partial_kernel, tile_rows=tile_rows,
                               rows=rows, needs_mask=needs_mask)

    partials = pl.pallas_call(
        kernel,
        out_shape=jax.ShapeDtypeStruct((num_tiles * SUBLANES, LANES),
                                       jnp.float32),
        grid=(num_tiles,),
        in_specs=[
            pl.BlockSpec((tile_rows, LANES), lambda i: (i, 0)),
            pl.BlockSpec((tile_rows, LANES), lambda i: (i, 0)),
        ],
        out_specs=pl.BlockSpec((SUBLANES, LANES), lambda i: (i, 0)),
        compiler_params=pltpu.CompilerParams(
            # Each grid step writes its own partial-sum block -> fully
            # parallel axis (lets v7x's two TensorCores split the grid).
            dimension_semantics=("parallel",),
        ),
    )(p2, t2)

    # Tiny final reduction + mean in plain JAX (num_tiles * 1024 f32 values).
    return jnp.sum(partials) / jnp.float32(n)


if __name__ == "__main__":
    key = jax.random.PRNGKey(0)
    k1, k2 = jax.random.split(key)

    # Small shapes consistent with a generic prediction/target pair.
    prediction = jax.random.normal(k1, (2, 4, 16, 16), dtype=jnp.float32)
    target = jax.random.normal(k2, (2, 4, 16, 16), dtype=jnp.float32)

    loss = mse_loss(prediction, target)
    jax.block_until_ready(loss)
    ref = jnp.mean((prediction - target) ** 2)
    assert jnp.allclose(loss, ref, rtol=1e-6, atol=1e-6), (loss, ref)

    # Also exercise the ragged-last-tile (masked) path.
    k3, k4 = jax.random.split(k2)
    pred2 = jax.random.normal(k3, (2, 3, 16, 16), dtype=jnp.float32)
    tgt2 = jax.random.normal(k4, (2, 3, 16, 16), dtype=jnp.float32)
    loss2 = mse_loss(pred2, tgt2)
    jax.block_until_ready(loss2)
    ref2 = jnp.mean((pred2 - tgt2) ** 2)
    assert jnp.allclose(loss2, ref2, rtol=1e-6, atol=1e-6), (loss2, ref2)

    print("KERNEL_OK")
</pallas_src>

<mosaic_0001>
module attributes {stable_mosaic.version = 11 : i64} {
  func.func @_mse_partial_kernel(%arg0: i32, %arg1: memref<16x128xf32, #tpu.memory_space<vmem>>, %arg2: memref<16x128xf32, #tpu.memory_space<vmem>>, %arg3: memref<8x128xf32, #tpu.memory_space<vmem>>) attributes {dimension_semantics = [#tpu.dimension_semantics<parallel>], iteration_bounds = array<i64: 1>, scalar_prefetch = 0 : i64, scratch_operands = 0 : i64, tpu.core_type = #tpu.core_type<tc>, window_params = [{transform_indices = @transform_0, window_bounds = array<i64: 16, 128>}, {transform_indices = @transform_1, window_bounds = array<i64: 16, 128>}, {transform_indices = @transform_2, window_bounds = array<i64: 8, 128>}]} {
    %c0 = arith.constant 0 : index
    %c0_0 = arith.constant 0 : index
    %0 = vector.load %arg1[%c0, %c0_0] : memref<16x128xf32, #tpu.memory_space<vmem>>, vector<16x128xf32>
    %c0_1 = arith.constant 0 : index
    %c0_2 = arith.constant 0 : index
    %1 = vector.load %arg2[%c0_1, %c0_2] : memref<16x128xf32, #tpu.memory_space<vmem>>, vector<16x128xf32>
    %2 = arith.subf %0, %1 : vector<16x128xf32>
    %3 = arith.mulf %2, %2 : vector<16x128xf32>
    %4 = vector.shape_cast %3 : vector<16x128xf32> to vector<2x8x128xf32>
    %cst = arith.constant dense<0.000000e+00> : vector<8x128xf32>
    %5 = vector.multi_reduction <add>, %4, %cst [0] : vector<2x8x128xf32> to vector<8x128xf32>
    %c0_3 = arith.constant 0 : index
    %c0_4 = arith.constant 0 : index
    %6 = vector.load %arg3[%c0_3, %c0_4] : memref<8x128xf32, #tpu.memory_space<vmem>>, vector<8x128xf32>
    tpu.vector_store %arg3[%c0_3, %c0_4], %5 {strides = array<i32>} : memref<8x128xf32, #tpu.memory_space<vmem>>, vector<8x128xf32>,
    return
  }
  func.func @transform_0(%arg0: i32) -> (i32, i32) {
    %c0_i32 = arith.constant 0 : i32
    %c0_i32_0 = arith.constant 0 : i32
    return %arg0, %c0_i32 : i32, i32
  }
  func.func @transform_1(%arg0: i32) -> (i32, i32) {
    %c0_i32 = arith.constant 0 : i32
    %c0_i32_0 = arith.constant 0 : i32
    return %arg0, %c0_i32 : i32, i32
  }
  func.func @transform_2(%arg0: i32) -> (i32, i32) {
    %c0_i32 = arith.constant 0 : i32
    %c0_i32_0 = arith.constant 0 : i32
    return %arg0, %c0_i32 : i32, i32
  }
}

</mosaic_0001>

<bundles_post_ra>
// kernel: mse_loss.1
= control target key start
LH: loop header
LB: loop body
LE: loop exit
PB: predicated region body
PF: predicated region fallthrough
CT: control target
= control target key end

     0   :  { %s55_s0 = inlined_call_operand.vmem [shape: f32[16,128], index: 0, kind: input, shape index: {}]   ;;  %s56_s1 = inlined_call_operand.vmem [shape: f32[16,128], index: 1, kind: input, shape index: {}]   ;;  %s57_s2 = inlined_call_operand.vmem [shape: f32[8,128], index: 2, kind: output, shape index: {}]  }
   0x1   :  { %v11_v0 = vld [vmem:[%s55_s0] sm:$0xff]  ;;  %v12_v1 = vld [vmem:[%s55_s0 + $0x8] sm:$0xff] }
   0x2   :  { %v13_v2 = vld [vmem:[%s56_s1] sm:$0xff]  ;;  %v14_v3 = vld [vmem:[%s56_s1 + $0x8] sm:$0xff] }
   0x3   :  { %v15_v4 = vsub.f32 %v11_v0, %v13_v2  ;;  %v16_v5 = vsub.f32 %v12_v1, %v14_v3 }
   0x5   :  { %v17_v6 = vmul.f32 %v15_v4, %v15_v4  ;;  %v18_v7 = vmul.f32 %v16_v5, %v16_v5 }
   0x7   :  { %v19_v8 = vadd.f32 %v18_v7, %v17_v6 }
   0x9   :  { %20 = vst [vmem:[%s57_s2] sm:$0xff] %v19_v8 }

</bundles_post_ra>
